<compile_context>
chip_gen: v7x
topology: tpu7x:2x2x1
jax: 0.10.0
libtpu: 0.0.40
codegen_flags: <defaults>
</compile_context>

<pallas_src>
import functools

import jax
import jax.numpy as jnp
from jax.experimental import pallas as pl
from jax.experimental.pallas import tpu as pltpu

_LANES = 128       # TPU vreg lane width; packed slabs & kernel output use it.
_ROW_TILE = 2048   # rows per grid step on the tiled path (multiple of 8).


def _se_mlp_kernel(x_ref, p_ref, out_ref, *, c_in, c_mid):
    # x_ref : (R, c_in)          activation rows
    # p_ref : (2, 128, 128)      p[0] = [W1^T ; b1 ; 0...], p[1] = [W2^T ; b2 ; 0...]
    # out   : (R, 128)           lanes >= c_out are exact zeros
    x = x_ref[...]
    p1 = p_ref[0].astype(x.dtype)   # no-op for f32 params; upcast for bf16 packing
    p2 = p_ref[1].astype(x.dtype)

    w1t = p1[:c_in, :]              # (c_in, 128); lanes >= c_mid are zero
    b1 = p1[c_in:c_in + 1, :]       # (1, 128);    lanes >= c_mid are zero
    h = jnp.dot(x, w1t, preferred_element_type=jnp.float32) + b1
    h = jnp.maximum(h, 0.0)         # ReLU; columns >= c_mid stay exactly 0

    # Fold b2 into the second matmul: inject 1.0 at column c_mid so the dot
    # picks up row c_mid of p2 (= b2).  Columns > c_mid of h are zero and
    # rows > c_mid of p2 are zero, so padding contributes nothing.
    col = jax.lax.broadcasted_iota(jnp.int32, h.shape, 1)
    h_aug = jnp.where(col == c_mid, jnp.float32(1.0), h).astype(x.dtype)

    o = jnp.dot(h_aug, p2, preferred_element_type=jnp.float32)
    out_ref[...] = o.astype(out_ref.dtype)


def pack_params(w1, b1, w2, b2, param_dtype=jnp.float32):
    """One-time packing of both conv weights+biases into a single lane-padded
    (2, 128, 128) slab.  Do this OUTSIDE the per-step hot path.

    w1: (C_mid, C_in)   conv2d13 weight squeezed over its 1x1 kernel
    b1: (C_mid,)        conv2d13 bias
    w2: (C_out, C_mid)  conv2d14 weight squeezed over its 1x1 kernel
    b2: (C_out,)        conv2d14 bias
    Layout: p[0, :C_in, :C_mid]  = W1^T,  p[0, C_in,  :C_mid] = b1
            p[1, :C_mid, :C_out] = W2^T,  p[1, C_mid, :C_out] = b2
    Everything else is zero (keeps padded lanes of hidden/output exactly 0).
    """
    c_mid, c_in = w1.shape
    c_out, _ = w2.shape
    assert c_in + 1 <= _LANES and c_mid + 1 <= _LANES and c_out <= _LANES
    p = jnp.zeros((2, _LANES, _LANES), param_dtype)
    p = p.at[0, :c_in, :c_mid].set(jnp.transpose(w1).astype(param_dtype))
    p = p.at[0, c_in, :c_mid].set(b1.astype(param_dtype))
    p = p.at[1, :c_mid, :c_out].set(jnp.transpose(w2).astype(param_dtype))
    p = p.at[1, c_mid, :c_out].set(b2.astype(param_dtype))
    return p


def _cost(rows, c_in, c_mid, c_out, x_itemsize, p_itemsize):
    flops = 2 * rows * (c_in * c_mid + c_mid * c_out)
    bytes_accessed = (rows * c_in * x_itemsize
                      + 2 * _LANES * _LANES * p_itemsize
                      + rows * _LANES * x_itemsize)
    return pl.CostEstimate(flops=flops, transcendentals=0,
                           bytes_accessed=bytes_accessed)


@functools.partial(jax.jit, static_argnames=("c_mid", "c_out"))
def se_mlp_forward(x_nchw, packed_params, *, c_mid, c_out):
    """Conv2d(C_in,C_mid,1) -> ReLU -> Conv2d(C_mid,C_out,1) for NCHW input."""
    N, C_in, H, W = x_nchw.shape
    rows = N * H * W

    # NCHW -> (rows, C_in).  With H = W = 1 this is a metadata-only reshape.
    if H == 1 and W == 1:
        x_rows = x_nchw.reshape(rows, C_in)
    else:
        x_rows = jnp.transpose(x_nchw, (0, 2, 3, 1)).reshape(rows, C_in)

    kernel = functools.partial(_se_mlp_kernel, c_in=C_in, c_mid=c_mid)
    cost = _cost(rows, C_in, c_mid, c_out,
                 x_nchw.dtype.itemsize, packed_params.dtype.itemsize)

    if rows > _ROW_TILE:
        # Row-tiled grid path: activation stream double-buffered, params stay
        # VMEM-resident (constant index_map), grid shards across TensorCores.
        # cdiv grid handles non-divisible rows via a partial last block (rows
        # are independent; out-of-bounds rows are dropped on writeback).
        out_lanes = pl.pallas_call(
            kernel,
            out_shape=jax.ShapeDtypeStruct((rows, _LANES), x_nchw.dtype),
            grid=(pl.cdiv(rows, _ROW_TILE),),
            in_specs=[
                pl.BlockSpec((_ROW_TILE, C_in), lambda i: (i, 0)),
                pl.BlockSpec((2, _LANES, _LANES), lambda i: (0, 0, 0)),
            ],
            out_specs=pl.BlockSpec((_ROW_TILE, _LANES), lambda i: (i, 0)),
            compiler_params=pltpu.CompilerParams(
                dimension_semantics=("parallel",)),
            cost_estimate=cost,
        )(x_rows, packed_params)
    else:
        # Grid-less path (rows <= _ROW_TILE): whole working set (< 2 MB)
        # lives in VMEM; single DMA per operand.
        out_lanes = pl.pallas_call(
            kernel,
            out_shape=jax.ShapeDtypeStruct((rows, _LANES), x_nchw.dtype),
            in_specs=[
                pl.BlockSpec(memory_space=pltpu.VMEM),  # x rows
                pl.BlockSpec(memory_space=pltpu.VMEM),  # packed param slab
            ],
            out_specs=pl.BlockSpec(memory_space=pltpu.VMEM),
            cost_estimate=cost,
        )(x_rows, packed_params)

    out_rows = out_lanes[:, :c_out]  # drop lane padding (exact zeros)
    if H == 1 and W == 1:
        return out_rows.reshape(N, c_out, H, W)
    return jnp.transpose(out_rows.reshape(N, H, W, c_out), (0, 3, 1, 2))


if __name__ == "__main__":
    key = jax.random.PRNGKey(0)
    k_x, k_w1, k_b1, k_w2, k_b2, k_x2 = jax.random.split(key, 6)

    # Shapes implied by the module: input (1, 96, 1, 1)
    N, C_in, H, W = 1, 96, 1, 1
    C_mid, C_out = 24, 96

    x = jax.random.normal(k_x, (N, C_in, H, W), dtype=jnp.float32)

    # Deterministic synthetic parameters (Conv2d weights squeezed over 1x1).
    w1 = jax.random.normal(k_w1, (C_mid, C_in), dtype=jnp.float32) * 0.1
    b1 = jax.random.normal(k_b1, (C_mid,), dtype=jnp.float32) * 0.1
    w2 = jax.random.normal(k_w2, (C_out, C_mid), dtype=jnp.float32) * 0.1
    b2 = jax.random.normal(k_b2, (C_out,), dtype=jnp.float32) * 0.1

    # One-time parameter packing, outside the per-call hot path.
    packed = pack_params(w1, b1, w2, b2)
    packed = jax.block_until_ready(packed)

    # --- Spec shape (rows = 1): grid-less path ---
    out = se_mlp_forward(x, packed, c_mid=C_mid, c_out=C_out)
    out = jax.block_until_ready(out)

    x_rows = x.reshape(N * H * W, C_in)
    ref = jnp.maximum(x_rows @ w1.T + b1, 0.0) @ w2.T + b2
    ref = ref.reshape(N, C_out, H, W)
    assert out.shape == (N, C_out, H, W)
    assert jnp.allclose(out, ref, atol=1e-5, rtol=1e-5)

    # --- Sanity check of the row-tiled path with a NON-divisible row count ---
    N2, H2, W2 = 1, 50, 50                      # rows = 2500 > _ROW_TILE, % != 0
    x2 = jax.random.normal(k_x2, (N2, C_in, H2, W2), dtype=jnp.float32)
    out2 = se_mlp_forward(x2, packed, c_mid=C_mid, c_out=C_out)
    out2 = jax.block_until_ready(out2)

    x2_rows = jnp.transpose(x2, (0, 2, 3, 1)).reshape(N2 * H2 * W2, C_in)
    ref2 = jnp.maximum(x2_rows @ w1.T + b1, 0.0) @ w2.T + b2
    ref2 = jnp.transpose(ref2.reshape(N2, H2, W2, C_out), (0, 3, 1, 2))
    assert out2.shape == (N2, C_out, H2, W2)
    assert jnp.allclose(out2, ref2, atol=1e-4, rtol=1e-4)

    print("KERNEL_OK")
</pallas_src>

<mosaic_0001>
module attributes {stable_mosaic.version = 11 : i64} {
  func.func @_se_mlp_kernel(%arg0: memref<1x96xf32, #tpu.memory_space<vmem>>, %arg1: memref<2x128x128xf32, #tpu.memory_space<vmem>>, %arg2: memref<1x128xf32, #tpu.memory_space<vmem>>) attributes {dimension_semantics = [], scalar_prefetch = 0 : i64, scratch_operands = 0 : i64, tpu.core_type = #tpu.core_type<tc>} {
    %c0 = arith.constant 0 : index
    %c0_0 = arith.constant 0 : index
    %0 = vector.load %arg0[%c0, %c0_0] : memref<1x96xf32, #tpu.memory_space<vmem>>, vector<1x96xf32>
    %c0_1 = arith.constant 0 : index
    %c0_2 = arith.constant 0 : index
    %c0_3 = arith.constant 0 : index
    %1 = vector.load %arg1[%c0_1, %c0_2, %c0_3] : memref<2x128x128xf32, #tpu.memory_space<vmem>>, vector<1x128x128xf32>
    %2 = vector.shape_cast %1 : vector<1x128x128xf32> to vector<128x128xf32>
    %c1 = arith.constant 1 : index
    %c0_4 = arith.constant 0 : index
    %c0_5 = arith.constant 0 : index
    %3 = vector.load %arg1[%c1, %c0_4, %c0_5] : memref<2x128x128xf32, #tpu.memory_space<vmem>>, vector<1x128x128xf32>
    %4 = vector.shape_cast %3 : vector<1x128x128xf32> to vector<128x128xf32>
    %5 = vector.extract_strided_slice %2 {offsets = [0, 0], sizes = [96, 128], strides = [1, 1]} : vector<128x128xf32> to vector<96x128xf32>
    %6 = vector.extract_strided_slice %2 {offsets = [96, 0], sizes = [1, 128], strides = [1, 1]} : vector<128x128xf32> to vector<1x128xf32>
    %cst = arith.constant dense<0.000000e+00> : vector<1x128xf32>
    %7 = tpu.matmul %0, %5, %cst {dimension_numbers = #tpu.dot_dimension_numbers<[1], [0], [0], [1], [0, 0, 1, 1], [], []>} : vector<1x96xf32>, vector<96x128xf32>, vector<1x128xf32> -> vector<1x128xf32>
    %8 = arith.addf %7, %6 : vector<1x128xf32>
    %cst_6 = arith.constant 0.000000e+00 : f32
    %9 = vector.broadcast %cst_6 : f32 to vector<1x128xf32>
    %10 = arith.maximumf %8, %9 : vector<1x128xf32>
    %11 = tpu.iota {dimensions = array<i32: 1>} : vector<1x128xi32>
    %c24_i32 = arith.constant 24 : i32
    %12 = vector.broadcast %c24_i32 : i32 to vector<1x128xi32>
    %13 = arith.cmpi eq, %11, %12 : vector<1x128xi32>
    %cst_7 = arith.constant 1.000000e+00 : f32
    %14 = vector.broadcast %cst_7 : f32 to vector<1x128xf32>
    %15 = arith.select %13, %14, %10 : vector<1x128xi1>, vector<1x128xf32>
    %cst_8 = arith.constant dense<0.000000e+00> : vector<1x128xf32>
    %16 = tpu.matmul %15, %4, %cst_8 {dimension_numbers = #tpu.dot_dimension_numbers<[1], [0], [0], [1], [0, 0, 1, 1], [], []>} : vector<1x128xf32>, vector<128x128xf32>, vector<1x128xf32> -> vector<1x128xf32>
    %c0_9 = arith.constant 0 : index
    %c0_10 = arith.constant 0 : index
    %17 = vector.load %arg2[%c0_9, %c0_10] : memref<1x128xf32, #tpu.memory_space<vmem>>, vector<1x128xf32>
    tpu.vector_store %arg2[%c0_9, %c0_10], %16 {strides = array<i32>} : memref<1x128xf32, #tpu.memory_space<vmem>>, vector<1x128xf32>,
    return
  }
}

</mosaic_0001>

<bundles_post_ra>
// kernel: se_mlp_forward.1
= control target key start
LH: loop header
LB: loop body
LE: loop exit
PB: predicated region body
PF: predicated region fallthrough
CT: control target
= control target key end

     0   :  { %7 = vsyncpa [#allocation3], 0  ;;  %s376_s9 = smov [#allocation2]   ;;  %s429_s0 = inlined_call_operand.vmem [shape: f32[1,96], index: 0, kind: input, shape index: {}]   ;;  %s430_s1 = inlined_call_operand.hbm [shape: f32[2,128,128], index: 1, kind: input, shape index: {}]   ;;  %s431_s2 = inlined_call_operand.vmem [shape: f32[1,128], index: 2, kind: output, shape index: {}]  }
   0x1   :  { %s15_s10 = sshll.u32 %s376_s9, 4  ;;  %s352_s13 = scalar_lea.hbm %s430_s1, 4096  ;;  %s16_s10 = int_to_ptr.vmem [resolvable:$true] %s15_s10 }
   0x2   :  { %p353_p0 = scmp.ne.s32.totalorder %s430_s1, %s352_s13  ;;  %p356_p1 = scmp.lt.u32.totalorder %s352_s13, %s430_s1 }
   0x4   :  { %p358_p2 = pnand %p356_p1, %p353_p0 }
   0x6   :  { %361 = shalt.err (!%p358_p2)
}
   0x7   :  { %s362_s18 = scalar_lea.vmem %s16_s10, 4096  ;;  %p367_p4 = scmp.lt.s32.totalorder %s16_s10, %s16_s10 }
   0x8   :  { %p363_p3 = scmp.ne.s32.totalorder %s16_s10, %s362_s18  ;;  %p368_p5 = scmp.lt.s32.totalorder %s362_s18, %s362_s18 }
   0xa   :  { %p369_p6 = por %p368_p5, %p367_p4 }
   0xc   :  { %p370_p7 = pnand %p369_p6, %p363_p3 }
   0xe   :  { %373 = shalt.err (!%p370_p7)
}
   0xf   :  { %s377_s19 = smov 128   ;;  %s378_s20 = smov 8  }
  0x10   :  { %21 = dma.hbm_to_vmem [thread:$0]  %s430_s1, 4096, %s16_s10, [#allocation3], %s377_s19, %s377_s19, %s378_s20  }
  0x11   :  { %374 = dma.done.wait [#allocation3], 4096  }
  0x12   :  { %375 = vsyncadd [#allocation3], 4294963200  ;;  %v379_v0 = vmov 0.0|0.0   ;;  %vm380_vm0 = vmmov 0   ;;  %v381_v1 = vmov 0.0   ;;  %v26_v2 = vld [vmem:[#allocation2] sm:$0xff]  ;;  %v131_v45 = vlaneseq }
  0x13   :  { %304 = vmatprep.subr.bf16.mxu0 %v379_v0  ;;  %266 = vmatprep.mubr.msk.f32.mxu0 %vm380_vm0, %v381_v1  ;;  %v27_v3 = vld [vmem:[#allocation2 + $0x8] sm:$0xff]  ;;  %v28_v4 = vld [vmem:[#allocation2 + $0x10] sm:$0xff]  ;;  %v29_v6 = vld [vmem:[#allocation2 + $0x18] sm:$0xff]  ;;  %vm56_vm1 = vcmask 785408  }
  0x14   :  { %322 = vmatprep.subr.bf16.mxu1 %v379_v0  ;;  %301 = vmatprep.mubr.msk.f32.mxu1 %vm380_vm0, %v381_v1  ;;  %v305_v5 = vpack.c.bf16 %v27_v3, %v26_v2  ;;  %v308_v7 = vpack.c.bf16 %v29_v6, %v28_v4  ;;  %v30_v8 = vld [vmem:[#allocation2 + $0x20] sm:$0xff]  ;;  %v31_v9 = vld [vmem:[#allocation2 + $0x28] sm:$0xff]  ;;  %v42_v13 = vld [vmem:[#allocation2 + $0x90] sm:$0xff]  ;;  %v132_v47 = vand.u32 127, %v131_v45 }
  0x15   :  { %v40_v10 = vld [vmem:[#allocation2 + $0x80] sm:$0xff]  ;;  %v41_v11 = vld [vmem:[#allocation2 + $0x88] sm:$0xff]  ;;  %v43_v14 = vld [vmem:[#allocation2 + $0x98] sm:$0xff]  ;;  %v311_v15 = vpack.c.bf16 %v31_v9, %v30_v8 }
  0x16   :  { %306 = vmatpush3.bf16.msra.mxu0 %v305_v5  ;;  %v323_v12 = vpack.c.bf16 %v41_v11, %v40_v10  ;;  %v32_v16 = vld [vmem:[#allocation2 + $0x30] sm:$0xff]  ;;  %v326_v17 = vpack.c.bf16 %v43_v14, %v42_v13  ;;  %v33_v18 = vld [vmem:[#allocation2 + $0x38] sm:$0xff]  ;;  %v44_v19 = vld [vmem:[#allocation2 + $0xa0] sm:$0xff]  ;;  %vm133_vm2 = vcmp.eq.s32.totalorder %v132_v47, 24 }
  0x17   :  { %307 = vmatprep.subr.bf16.mxu0 %v379_v0  ;;  %v45_v20 = vld [vmem:[#allocation2 + $0xa8] sm:$0xff]  ;;  %v314_v21 = vpack.c.bf16 %v33_v18, %v32_v16  ;;  %v34_v22 = vld [vmem:[#allocation2 + $0x40] sm:$0xff]  ;;  %v46_v25 = vld [vmem:[#allocation2 + $0xb0] sm:$0xff] }
  0x18   :  { %324 = vmatpush3.bf16.msra.mxu1 %v323_v12  ;;  %v329_v23 = vpack.c.bf16 %v45_v20, %v44_v19  ;;  %v35_v24 = vld [vmem:[#allocation2 + $0x48] sm:$0xff]  ;;  %v47_v26 = vld [vmem:[#allocation2 + $0xb8] sm:$0xff]  ;;  %v36_v28 = vld [vmem:[#allocation2 + $0x50] sm:$0xff] }
  0x19   :  { %325 = vmatprep.subr.bf16.mxu1 %v379_v0  ;;  %v317_v27 = vpack.c.bf16 %v35_v24, %v34_v22  ;;  %v332_v29 = vpack.c.bf16 %v47_v26, %v46_v25  ;;  %v37_v30 = vld [vmem:[#allocation2 + $0x58] sm:$0xff]  ;;  %v48_v31 = vld [vmem:[#allocation2 + $0xc0] sm:$0xff]  ;;  %v49_v32 = vld [vmem:[#allocation2 + $0xc8] sm:$0xff] }
  0x1a   :  { %309 = vmatpush3.bf16.msra.mxu0 %v308_v7  ;;  %v320_v33 = vpack.c.bf16 %v37_v30, %v36_v28  ;;  %v335_v34 = vpack.c.bf16 %v49_v32, %v48_v31  ;;  %v50_v35 = vld [vmem:[#allocation2 + $0xd0] sm:$0xff]  ;;  %v51_v36 = vld [vmem:[#allocation2 + $0xd8] sm:$0xff]  ;;  %v25_v37 = vld [vmem:[%s429_s0] sm:$0x1] }
  0x1b   :  { %310 = vmatprep.subr.bf16.mxu0 %v379_v0  ;;  %v338_v38 = vpack.c.bf16 %v51_v36, %v50_v35  ;;  %v52_v39 = vld [vmem:[#allocation2 + $0xe0] sm:$0xff]  ;;  %v53_v40 = vld [vmem:[#allocation2 + $0xe8] sm:$0xff]  ;;  %v54_v42 = vld [vmem:[#allocation2 + $0xf0] sm:$0xff] }
  0x1c   :  { %327 = vmatpush3.bf16.msra.mxu1 %v326_v17  ;;  %v341_v41 = vpack.c.bf16 %v53_v40, %v52_v39  ;;  %v55_v43 = vld [vmem:[#allocation2 + $0xf8] sm:$0xff]  ;;  %v38_v46 = vld [vmem:[#allocation2 + $0x60] sm:$0xff] }
  0x1d   :  { %328 = vmatprep.subr.bf16.mxu1 %v379_v0  ;;  %v344_v44 = vpack.c.bf16 %v55_v43, %v54_v42 }
  0x1e   :  { %312 = vmatpush3.bf16.msra.mxu0 %v311_v15 }
  0x1f   :  { %313 = vmatprep.subr.bf16.mxu0 %v379_v0 }
  0x20   :  { %330 = vmatpush3.bf16.msra.mxu1 %v329_v23 }
  0x21   :  { %331 = vmatprep.subr.bf16.mxu1 %v379_v0 }
  0x22   :  { %315 = vmatpush3.bf16.msra.mxu0 %v314_v21 }
  0x23   :  { %316 = vmatprep.subr.bf16.mxu0 %v379_v0 }
  0x24   :  { %333 = vmatpush3.bf16.msra.mxu1 %v332_v29 }
  0x25   :  { %334 = vmatprep.subr.bf16.mxu1 %v379_v0 }
  0x26   :  { %318 = vmatpush3.bf16.msra.mxu0 %v317_v27 }
  0x27   :  { %319 = vmatprep.subr.bf16.mxu0 %v379_v0 }
  0x28   :  { %336 = vmatpush3.bf16.msra.mxu1 %v335_v34 }
  0x29   :  { %337 = vmatprep.subr.bf16.mxu1 %v379_v0 }
  0x2a   :  { %321 = vmatpush3.bf16.msra.mxu0 %v320_v33 }
  0x2c   :  { %339 = vmatpush3.bf16.msra.mxu1 %v338_v38 }
  0x2d   :  { %267 = vmatmul.mubr.msk.f32.vlgmr.msra.gmra.mrb[0].mxu0 %vm56_vm1, %v25_v37  ;;  %340 = vmatprep.subr.bf16.mxu1 %v379_v0 }
  0x30   :  { %342 = vmatpush3.bf16.msra.mxu1 %v341_v41 }
  0x31   :  { %343 = vmatprep.subr.bf16.mxu1 %v379_v0 }
  0x34   :  { %345 = vmatpush3.bf16.msra.mxu1 %v344_v44 }
 0x100   :  { %v126_v48 = vpop.f32.mrb[0].mxu0 }
 0x101   :  { %v127_v49 = vadd.f32 %v126_v48, %v38_v46  ;;  %v268_v50 = vpop.f32.mrb[1].mxu0 }
 0x103   :  { %v130_v51 = vmax.f32 %v127_v49, 0.0 }
 0x105   :  { %v134_v52 = vsel %vm133_vm2, 1.0, %v130_v51 }
 0x106   :  { %302 = vmatmul.mubr.f32.vlgmr.msra.gmra.mrb[0].mxu1 %v134_v52 }
 0x1d9   :  { %v201_v53 = vpop.f32.mrb[0].mxu1 }
 0x1da   :  { %205 = vst [vmem:[%s431_s2] sm:$0x1] %v201_v53  ;;  %v303_v54 = vpop.f32.mrb[1].mxu1 }
 0x1db   :  { %210 = vsyncpa [#allocation3], 1 }

</bundles_post_ra>
